<compile_context>
chip_gen: v6e
topology: v6e:2x2x1
jax: 0.10.0
libtpu: 0.0.40
codegen_flags: <defaults>
</compile_context>

<pallas_src>
import jax
import jax.numpy as jnp
from jax.experimental import pallas as pl
from jax.experimental.pallas import tpu as pltpu

OUT_PAD = 128  # lane-dense padded width of the final (2-wide) layer


def _round_up(n, m):
    return ((n + m - 1) // m) * m


def _discriminator_kernel(x_ref, w1_ref, b1_ref, w2_ref, b2_ref, w3_ref, b3_ref,
                          o_ref):
    """Fused 3-layer MLP (1x1-conv equivalent), ReLU after every layer.

    x/weights are bf16; every dot accumulates in f32 on the MXU; bias-add and
    ReLU happen in f32 (safe on v5e where the VPU has no bf16 ALU)."""
    x = x_ref[...]
    h1 = jnp.dot(x, w1_ref[...], preferred_element_type=jnp.float32) + b1_ref[...]
    h1 = jnp.maximum(h1, 0.0)
    h2 = jnp.dot(h1.astype(w2_ref.dtype), w2_ref[...],
                 preferred_element_type=jnp.float32) + b2_ref[...]
    h2 = jnp.maximum(h2, 0.0)
    h3 = jnp.dot(h2.astype(w3_ref.dtype), w3_ref[...],
                 preferred_element_type=jnp.float32) + b3_ref[...]
    h3 = jnp.maximum(h3, 0.0)
    o_ref[...] = h3.astype(o_ref.dtype)  # (TB, 128): unmasked lane-dense store


def discriminator_forward(x, params, *, block_b=512,
                          compute_dtype=jnp.bfloat16):
    """x: (B, C) float32.  params: dict of w1,b1,w2,b2,w3,b3 (f32, (in,out))."""
    B, C = x.shape
    w1 = params["w1"].astype(compute_dtype)
    w2 = params["w2"].astype(compute_dtype)
    w3 = params["w3"].astype(compute_dtype)
    b1 = params["b1"].reshape(1, -1).astype(jnp.float32)
    b2 = params["b2"].reshape(1, -1).astype(jnp.float32)
    b3 = params["b3"].reshape(1, -1).astype(jnp.float32)
    C1 = w1.shape[1]
    C2 = w2.shape[1]
    C3 = w3.shape[1]  # == 2

    # Lane-dense final layer: zero-pad to 128 output columns.  Padded columns
    # see relu(0 + 0) = 0 and are sliced away below, so semantics are exact.
    w3p = jnp.zeros((C2, OUT_PAD), compute_dtype).at[:, :C3].set(w3)
    b3p = jnp.zeros((1, OUT_PAD), jnp.float32).at[:, :C3].set(b3)

    # Batch tiling: sublane-aligned tile, sized well under v7x's 64 MiB VMEM.
    tb = min(block_b, _round_up(B, 8))
    Bp = _round_up(B, tb)
    xb = x.astype(compute_dtype)
    if Bp != B:
        xb = jnp.pad(xb, ((0, Bp - B), (0, 0)))

    grid = (Bp // tb,)
    itemsize = jnp.dtype(compute_dtype).itemsize
    cost = pl.CostEstimate(
        flops=2 * Bp * (C * C1 + C1 * C2 + C2 * OUT_PAD),
        transcendentals=0,
        bytes_accessed=int(
            Bp * C * itemsize                                   # activations in
            + (C * C1 + C1 * C2 + C2 * OUT_PAD) * itemsize      # weights
            + (C1 + C2 + OUT_PAD) * 4                           # biases (f32)
            + Bp * OUT_PAD * 4),                                # output (f32)
    )

    out = pl.pallas_call(
        _discriminator_kernel,
        out_shape=jax.ShapeDtypeStruct((Bp, OUT_PAD), jnp.float32),
        grid_spec=pltpu.PrefetchScalarGridSpec(
            num_scalar_prefetch=0,
            grid=grid,
            in_specs=[
                pl.BlockSpec((tb, C), lambda i: (i, 0)),        # x tile (pipelined)
                pl.BlockSpec((C, C1), lambda i: (0, 0)),        # weights: resident
                pl.BlockSpec((1, C1), lambda i: (0, 0)),
                pl.BlockSpec((C1, C2), lambda i: (0, 0)),
                pl.BlockSpec((1, C2), lambda i: (0, 0)),
                pl.BlockSpec((C2, OUT_PAD), lambda i: (0, 0)),
                pl.BlockSpec((1, OUT_PAD), lambda i: (0, 0)),
            ],
            out_specs=pl.BlockSpec((tb, OUT_PAD), lambda i: (i, 0)),
        ),
        compiler_params=pltpu.CompilerParams(
            dimension_semantics=("parallel",),   # 2x on v7x megacore
            vmem_limit_bytes=40 * 1024 * 1024,   # headroom on v7x's 64 MiB VMEM
        ),
        cost_estimate=cost,
    )(xb, w1, b1, w2, b2, w3p, b3p)

    return out[:B, :C3]


def init_params(key, outputs_size, K=2):
    """Deterministic synthetic init matching the PyTorch layer shapes."""
    c0 = outputs_size
    c1 = outputs_size // K
    c2 = c1 // K
    c3 = 2
    keys = jax.random.split(key, 6)

    def lin(kw, kb, fan_in, fan_out):
        # Kaiming-uniform-ish scale, deterministic; stored as (in, out).
        bound = 1.0 / jnp.sqrt(fan_in)
        w = jax.random.uniform(kw, (fan_in, fan_out), jnp.float32, -bound, bound)
        b = jax.random.uniform(kb, (1, fan_out), jnp.float32, -bound, bound)
        return w, b

    w1, b1 = lin(keys[0], keys[1], c0, c1)
    w2, b2 = lin(keys[2], keys[3], c1, c2)
    w3, b3 = lin(keys[4], keys[5], c2, c3)
    return {"w1": w1, "b1": b1, "w2": w2, "b2": b2, "w3": w3, "b3": b3}


def reference_forward(x, p, compute_dtype=jnp.bfloat16):
    """Pure-JAX reference mirroring the kernel's bf16-weight / f32-accumulate
    arithmetic (1x1 convs == linears)."""
    w1 = p["w1"].astype(compute_dtype)
    w2 = p["w2"].astype(compute_dtype)
    w3 = p["w3"].astype(compute_dtype)
    h = jnp.maximum(jnp.dot(x.astype(compute_dtype), w1,
                            preferred_element_type=jnp.float32) + p["b1"], 0.0)
    h = jnp.maximum(jnp.dot(h.astype(compute_dtype), w2,
                            preferred_element_type=jnp.float32) + p["b2"], 0.0)
    h = jnp.maximum(jnp.dot(h.astype(compute_dtype), w3,
                            preferred_element_type=jnp.float32) + p["b3"], 0.0)
    return h  # already (B, 2), equivalent to out.view(B, -1)


if __name__ == "__main__":
    key = jax.random.PRNGKey(0)
    k_x, k_p = jax.random.split(key)

    B = 8              # batch
    outputs_size = 32  # feature channels fed to the discriminator
    K = 2

    x = jax.random.normal(k_x, (B, outputs_size), dtype=jnp.float32)
    params = init_params(k_p, outputs_size, K)

    out = discriminator_forward(x, params)
    out = jax.block_until_ready(out)

    ref = reference_forward(x, params)
    assert out.shape == (B, 2), out.shape
    assert jnp.allclose(out, ref, atol=1e-2, rtol=1e-2), "mismatch vs reference"

    print("KERNEL_OK")
</pallas_src>

<mosaic_0001>
module attributes {stable_mosaic.version = 11 : i64} {
  func.func @_discriminator_kernel(%arg0: i32, %arg1: memref<8x32xbf16, #tpu.memory_space<vmem>>, %arg2: memref<32x16xbf16, #tpu.memory_space<vmem>>, %arg3: memref<1x16xf32, #tpu.memory_space<vmem>>, %arg4: memref<16x8xbf16, #tpu.memory_space<vmem>>, %arg5: memref<1x8xf32, #tpu.memory_space<vmem>>, %arg6: memref<8x128xbf16, #tpu.memory_space<vmem>>, %arg7: memref<1x128xf32, #tpu.memory_space<vmem>>, %arg8: memref<8x128xf32, #tpu.memory_space<vmem>>) attributes {dimension_semantics = [#tpu.dimension_semantics<parallel>], iteration_bounds = array<i64: 1>, scalar_prefetch = 0 : i64, scratch_operands = 0 : i64, tpu.core_type = #tpu.core_type<tc>, window_params = [{transform_indices = @transform_0, window_bounds = array<i64: 8, 32>}, {pipeline_mode = #tpu.pipeline_mode<synchronous>, transform_indices = @transform_1, window_bounds = array<i64: 32, 16>}, {pipeline_mode = #tpu.pipeline_mode<synchronous>, transform_indices = @transform_2, window_bounds = array<i64: 1, 16>}, {pipeline_mode = #tpu.pipeline_mode<synchronous>, transform_indices = @transform_3, window_bounds = array<i64: 16, 8>}, {pipeline_mode = #tpu.pipeline_mode<synchronous>, transform_indices = @transform_4, window_bounds = array<i64: 1, 8>}, {pipeline_mode = #tpu.pipeline_mode<synchronous>, transform_indices = @transform_5, window_bounds = array<i64: 8, 128>}, {pipeline_mode = #tpu.pipeline_mode<synchronous>, transform_indices = @transform_6, window_bounds = array<i64: 1, 128>}, {transform_indices = @transform_7, window_bounds = array<i64: 8, 128>}]} {
    %c0 = arith.constant 0 : index
    %c0_0 = arith.constant 0 : index
    %0 = vector.load %arg1[%c0, %c0_0] : memref<8x32xbf16, #tpu.memory_space<vmem>>, vector<8x32xbf16>
    %c0_1 = arith.constant 0 : index
    %c0_2 = arith.constant 0 : index
    %1 = vector.load %arg2[%c0_1, %c0_2] : memref<32x16xbf16, #tpu.memory_space<vmem>>, vector<32x16xbf16>
    %cst = arith.constant dense<0.000000e+00> : vector<8x16xf32>
    %2 = tpu.matmul %0, %1, %cst {dimension_numbers = #tpu.dot_dimension_numbers<[1], [0], [0], [1], [0, 0, 1, 1], [], []>} : vector<8x32xbf16>, vector<32x16xbf16>, vector<8x16xf32> -> vector<8x16xf32>
    %c0_3 = arith.constant 0 : index
    %c0_4 = arith.constant 0 : index
    %3 = vector.load %arg3[%c0_3, %c0_4] : memref<1x16xf32, #tpu.memory_space<vmem>>, vector<1x16xf32>
    %4 = vector.broadcast %3 : vector<1x16xf32> to vector<8x16xf32>
    %5 = arith.addf %2, %4 : vector<8x16xf32>
    %cst_5 = arith.constant 0.000000e+00 : f32
    %6 = vector.broadcast %cst_5 : f32 to vector<8x16xf32>
    %7 = arith.maximumf %5, %6 : vector<8x16xf32>
    %8 = arith.truncf %7 : vector<8x16xf32> to vector<8x16xbf16>
    %c0_6 = arith.constant 0 : index
    %c0_7 = arith.constant 0 : index
    %9 = vector.load %arg4[%c0_6, %c0_7] : memref<16x8xbf16, #tpu.memory_space<vmem>>, vector<16x8xbf16>
    %cst_8 = arith.constant dense<0.000000e+00> : vector<8x8xf32>
    %10 = tpu.matmul %8, %9, %cst_8 {dimension_numbers = #tpu.dot_dimension_numbers<[1], [0], [0], [1], [0, 0, 1, 1], [], []>} : vector<8x16xbf16>, vector<16x8xbf16>, vector<8x8xf32> -> vector<8x8xf32>
    %c0_9 = arith.constant 0 : index
    %c0_10 = arith.constant 0 : index
    %11 = vector.load %arg5[%c0_9, %c0_10] : memref<1x8xf32, #tpu.memory_space<vmem>>, vector<1x8xf32>
    %12 = vector.broadcast %11 : vector<1x8xf32> to vector<8x8xf32>
    %13 = arith.addf %10, %12 : vector<8x8xf32>
    %cst_11 = arith.constant 0.000000e+00 : f32
    %14 = vector.broadcast %cst_11 : f32 to vector<8x8xf32>
    %15 = arith.maximumf %13, %14 : vector<8x8xf32>
    %16 = arith.truncf %15 : vector<8x8xf32> to vector<8x8xbf16>
    %c0_12 = arith.constant 0 : index
    %c0_13 = arith.constant 0 : index
    %17 = vector.load %arg6[%c0_12, %c0_13] : memref<8x128xbf16, #tpu.memory_space<vmem>>, vector<8x128xbf16>
    %cst_14 = arith.constant dense<0.000000e+00> : vector<8x128xf32>
    %18 = tpu.matmul %16, %17, %cst_14 {dimension_numbers = #tpu.dot_dimension_numbers<[1], [0], [0], [1], [0, 0, 1, 1], [], []>} : vector<8x8xbf16>, vector<8x128xbf16>, vector<8x128xf32> -> vector<8x128xf32>
    %c0_15 = arith.constant 0 : index
    %c0_16 = arith.constant 0 : index
    %19 = vector.load %arg7[%c0_15, %c0_16] : memref<1x128xf32, #tpu.memory_space<vmem>>, vector<1x128xf32>
    %20 = vector.broadcast %19 : vector<1x128xf32> to vector<8x128xf32>
    %21 = arith.addf %18, %20 : vector<8x128xf32>
    %cst_17 = arith.constant 0.000000e+00 : f32
    %22 = vector.broadcast %cst_17 : f32 to vector<8x128xf32>
    %23 = arith.maximumf %21, %22 : vector<8x128xf32>
    %c0_18 = arith.constant 0 : index
    %c0_19 = arith.constant 0 : index
    %24 = vector.load %arg8[%c0_18, %c0_19] : memref<8x128xf32, #tpu.memory_space<vmem>>, vector<8x128xf32>
    tpu.vector_store %arg8[%c0_18, %c0_19], %23 {strides = array<i32>} : memref<8x128xf32, #tpu.memory_space<vmem>>, vector<8x128xf32>,
    return
  }
  func.func @transform_0(%arg0: i32) -> (i32, i32) {
    %c0_i32 = arith.constant 0 : i32
    %c0_i32_0 = arith.constant 0 : i32
    return %arg0, %c0_i32 : i32, i32
  }
  func.func @transform_1(%arg0: i32) -> (i32, i32) {
    %c0_i32 = arith.constant 0 : i32
    %c0_i32_0 = arith.constant 0 : i32
    %c0_i32_1 = arith.constant 0 : i32
    return %c0_i32, %c0_i32_0 : i32, i32
  }
  func.func @transform_2(%arg0: i32) -> (i32, i32) {
    %c0_i32 = arith.constant 0 : i32
    %c0_i32_0 = arith.constant 0 : i32
    %c0_i32_1 = arith.constant 0 : i32
    return %c0_i32, %c0_i32_0 : i32, i32
  }
  func.func @transform_3(%arg0: i32) -> (i32, i32) {
    %c0_i32 = arith.constant 0 : i32
    %c0_i32_0 = arith.constant 0 : i32
    %c0_i32_1 = arith.constant 0 : i32
    return %c0_i32, %c0_i32_0 : i32, i32
  }
  func.func @transform_4(%arg0: i32) -> (i32, i32) {
    %c0_i32 = arith.constant 0 : i32
    %c0_i32_0 = arith.constant 0 : i32
    %c0_i32_1 = arith.constant 0 : i32
    return %c0_i32, %c0_i32_0 : i32, i32
  }
  func.func @transform_5(%arg0: i32) -> (i32, i32) {
    %c0_i32 = arith.constant 0 : i32
    %c0_i32_0 = arith.constant 0 : i32
    %c0_i32_1 = arith.constant 0 : i32
    return %c0_i32, %c0_i32_0 : i32, i32
  }
  func.func @transform_6(%arg0: i32) -> (i32, i32) {
    %c0_i32 = arith.constant 0 : i32
    %c0_i32_0 = arith.constant 0 : i32
    %c0_i32_1 = arith.constant 0 : i32
    return %c0_i32, %c0_i32_0 : i32, i32
  }
  func.func @transform_7(%arg0: i32) -> (i32, i32) {
    %c0_i32 = arith.constant 0 : i32
    %c0_i32_0 = arith.constant 0 : i32
    return %arg0, %c0_i32 : i32, i32
  }
}

</mosaic_0001>

<bundles_post_ra>
// kernel: tpu_custom_call.1
= control target key start
LH: loop header
LB: loop body
LE: loop exit
PB: predicated region body
PF: predicated region fallthrough
CT: control target
= control target key end

     0   :  { %v295_v1 = vmov 0.0   ;;  %vm296_vm0 = vmmov 0   ;;  %s368_s0 = inlined_call_operand.vmem [shape: bf16[8,32], index: 0, kind: input, shape index: {}]   ;;  %s369_s1 = inlined_call_operand.vmem [shape: bf16[32,16], index: 1, kind: input, shape index: {}]   ;;  %s370_s2 = inlined_call_operand.vmem [shape: f32[1,16], index: 2, kind: input, shape index: {}]   ;;  %s371_s3 = inlined_call_operand.vmem [shape: bf16[16,8], index: 3, kind: input, shape index: {}]   ;;  %s372_s4 = inlined_call_operand.vmem [shape: f32[1,8], index: 4, kind: input, shape index: {}]   ;;  %s373_s5 = inlined_call_operand.vmem [shape: bf16[8,128], index: 5, kind: input, shape index: {}]   ;;  %s374_s6 = inlined_call_operand.vmem [shape: f32[1,128], index: 6, kind: input, shape index: {}]   ;;  %s375_s7 = inlined_call_operand.hbm [shape: f32[8,128], index: 7, kind: output, shape index: {}]  }
   0x1   :  { %v270_v0 = vld [vmem:[%s369_s1 + $0x8] sm:$0xff]   ;;  %247 = vmatprep.subr.bf16.mxu0 %v295_v1  ;;  %255 = vmatprep.subr.bf16.mxu1 %v295_v1  ;;  %v271_v2 = vld [vmem:[%s369_s1] sm:$0xff]  }
   0x2   :  { %248 = vmatpush3.bf16.msra.mxu0 %v270_v0  ;;  %251 = vmatprep.mubr.msk.bf16.mxu0 %vm296_vm0, %v295_v1 }
   0x3   :  { %249 = vmatprep.subr.bf16.mxu0 %v295_v1  ;;  %257 = vmatprep.mubr.msk.bf16.mxu1 %vm296_vm0, %v295_v1 }
   0x4   :  { %12 = vsyncpa [#allocation3], 0  ;;  %v28_v3 = vld [vmem:[%s368_s0] sm:$0xf]  ;;  %vm52_vm1 = vcmask 261120   ;;  %vm171_vm2 = vcmask 1043456  }
   0x5   :  { %v272_v4 = vld [vmem:[%s371_s3] sm:$0xff]   ;;  %vm113_vm3 = vcmask 130048   ;;  %vm167_vm4 = vcmask 64512   ;;  %s297_s12 = smov [#allocation2]  }
   0x6   :  { %250 = vmatpush3.bf16.msra.mxu0 %v271_v2  ;;  %256 = vmatpush3.bf16.msra.mxu1 %v272_v4  ;;  %v231_v5 = vld [vmem:[%s370_s2] ss:$0 sm:$0xff]  ;;  %s223_s13 = sshll.u32 %s297_s12, 4  ;;  %s224_s13 = int_to_ptr.vmem [resolvable:$true] %s223_s13 }
   0x7   :  { %261 = vmatprep.subr.bf16.mxu1 %v295_v1  ;;  %v159_v9 = vld [vmem:[%s373_s5] sm:$0xf]  ;;  %p278_p1 = scmp.lt.s32.totalorder %s224_s13, %s224_s13 }
   0x8   :  { %v173_v13 = vsel %vm171_vm2, %v159_v9, 0  ;;  %v235_v15 = vld [vmem:[%s372_s4] ss:$0 sm:$0xff]  ;;  %s273_s4 = scalar_lea.vmem %s224_s13, 128 }
   0x9   :  { %252 = vmatmul.mubr.msk.bf16.vlgmr.msra.gmra.mxu0 %vm52_vm1, %v28_v3  ;;  %v238_v23 = vld [vmem:[%s374_s6] ss:$0 sm:$0xff]  ;;  %p274_p0 = scmp.ne.s32.totalorder %s224_s13, %s273_s4  ;;  %p279_p2 = scmp.lt.s32.totalorder %s273_s4, %s273_s4 }
   0xb   :  { %p280_p3 = por %p279_p2, %p278_p1 }
   0xd   :  { %p281_p4 = pnand %p280_p3, %p274_p0 }
  0xc9   :  { %v90_v6 = vpop.f32.mrf.mxu0 }
  0xca   :  { %v91_v7 = vadd.f32 %v231_v5, %v90_v6 }
  0xcb   :  { %v253_v8 = vpop.f32.mrf.mxu0 }
  0xcc   :  { %v96_v10 = vmax.f32 %v91_v7, 0.0 }
  0xcd   :  { %v93_v11 = vpop.f32.mrf.mxu0 }
  0xce   :  { %v97_v12 = vpack.c.bf16 %v96_v10, %v96_v10 }
  0xcf   :  { %v254_v14 = vpop.f32.mrf.mxu0 }
  0xd0   :  { %258 = vmatmul.mubr.msk.bf16.vlgmr.msra.gmra.mxu1 %vm113_vm3, %v97_v12 }
  0xd1   :  { %262 = vmatpush3.bf16.msra.mxu1 %v173_v13  ;;  %263 = vmatprep.mubr.msk.bf16.mxu1 %vm296_vm0, %v295_v1 }
 0x190   :  { %v151_v16 = vpop.f32.mrf.mxu1 }
 0x191   :  { %v152_v17 = vadd.f32 %v235_v15, %v151_v16 }
 0x192   :  { %v259_v18 = vpop.f32.mrf.mxu1 }
 0x193   :  { %v157_v19 = vmax.f32 %v152_v17, 0.0 }
 0x194   :  { %v154_v20 = vpop.f32.mrf.mxu1 }
 0x195   :  { %v158_v21 = vpack.c.bf16 %v157_v19, %v157_v19 }
 0x196   :  { %v260_v22 = vpop.f32.mrf.mxu1 }
 0x197   :  { %264 = vmatmul.mubr.msk.bf16.vlgmr.msra.gmra.mxu1 %vm167_vm4, %v158_v21 }
 0x257   :  { %v209_v24 = vpop.f32.mrf.mxu1 }
 0x258   :  { %v210_v25 = vadd.f32 %v238_v23, %v209_v24 }
 0x259   :  { %v265_v26 = vpop.f32.mrf.mxu1 }
 0x25a   :  { %v215_v27 = vmax.f32 %v210_v25, 0.0 }
 0x25b   :  { %v212_v28 = vpop.f32.mrf.mxu1 }
 0x25c   :  { %216 = vst [vmem:[#allocation2] sm:$0xff] %v215_v27 }
 0x25d   :  { %v266_v29 = vpop.f32.mrf.mxu1 }
 0x25e   :  { %284 = shalt.err (!%p281_p4)
}
 0x25f   :  { %226 = dma.vmem_to_hbm [thread:$0]  %s224_s13, 128, %s375_s7, [#allocation3]  }
 0x260   :  { %293 = dma.done.wait [#allocation3], 128  }
 0x261   :  { %294 = vsyncadd [#allocation3], 4294967168 }
 0x262   :  { %230 = vsyncpa [#allocation3], 1 }

</bundles_post_ra>
